<compile_context>
chip_gen: v7x
topology: tpu7x:2x2x1
jax: 0.10.0
libtpu: 0.0.40
codegen_flags: <defaults>
</compile_context>

<pallas_src>
import functools
import math

import jax
import jax.numpy as jnp
from jax.experimental import pallas as pl
from jax.experimental.pallas import tpu as pltpu

NUM_FRAMES = 2
N_CONC = NUM_FRAMES + 1

CONFIG1 = [(32, 3, 1), (64, 3, 2), ['B', 1], (128, 3, 2), ['B', 2],
           (256, 3, 2), ['B', 4], (512, 3, 2)]

CONFIG_BOTH = [(32, 3, 1), ['Conc'], (64 * N_CONC, 3, 2), ['B', 1], ['Conc'],
               (128 * N_CONC, 3, 2), ['B', 2], ['Conc'], (256 * N_CONC, 3, 2),
               ['B', 8], ['Conc'], (512 * N_CONC, 3, 2), ['Conc'],
               (512 * N_CONC, 3, 1), (1024, 1, 1), ['B', 8], (1024, 3, 2),
               ['B', 4], (512, 1, 1), (1024, 3, 1), 'S', (256, 1, 1), 'U',
               (256, 1, 1), (512, 3, 1), 'S', (128, 1, 1), 'U', (128, 1, 1),
               (256, 3, 1), 'S']

LANE = 128  # lane width / minimum N,K tile granularity


def round_up(x, m):
    return ((x + m - 1) // m) * m


# --------------------------- Pallas kernel ---------------------------

def _gemm_bn_act_kernel(a_ref, b_ref, sb_ref, o_ref, *, use_act):
    """One (TM, TN) output tile; K-reduction over grid axis 2.

    a_ref: (TM, TK) bf16    b_ref: (TK, TN) bf16
    sb_ref: (8, TN) f32 (row 0 = scale, row 1 = bias)
    o_ref: (TM, TN) f32  -- used directly as the resident accumulator.
    """
    k = pl.program_id(2)

    @pl.when(k == 0)
    def _():
        o_ref[...] = jnp.zeros_like(o_ref)

    o_ref[...] += jnp.dot(a_ref[...], b_ref[...],
                          preferred_element_type=jnp.float32)

    @pl.when(k == pl.num_programs(2) - 1)
    def _():
        # Folded BatchNorm (or conv bias): y = acc * scale + bias
        y = o_ref[...] * sb_ref[0:1, :] + sb_ref[1:2, :]
        if use_act:
            y = jnp.where(y > 0, y, 0.1 * y)  # LeakyReLU(0.1)
        o_ref[...] = y


def _pick_tk(K):
    if K <= 1024:
        return K
    for cand in (1024, 896, 768, 640, 512, 384, 256, 128):
        if K % cand == 0:
            return cand
    return 128


@functools.partial(jax.jit, static_argnames=("use_act",))
def gemm_bn_act(a, b, sb, use_act):
    """a: (Mp, Kp) bf16, b: (Kp, Np) bf16, sb: (8, Np) f32 -> (Mp, Np) f32.

    Mp is a multiple of 16 (<=128) or of 128; Kp, Np are multiples of 128.
    """
    M, K = a.shape
    _, N = b.shape
    TM = M if M <= 128 else 128
    TN = 256 if (N % 256 == 0) else 128
    TK = _pick_tk(K)
    grid = (M // TM, N // TN, K // TK)
    kern = functools.partial(_gemm_bn_act_kernel, use_act=use_act)
    return pl.pallas_call(
        kern,
        out_shape=jax.ShapeDtypeStruct((M, N), jnp.float32),
        grid_spec=pltpu.PrefetchScalarGridSpec(
            num_scalar_prefetch=0,
            grid=grid,
            in_specs=[
                pl.BlockSpec((TM, TK), lambda i, j, k: (i, k)),
                pl.BlockSpec((TK, TN), lambda i, j, k: (k, j)),
                pl.BlockSpec((8, TN), lambda i, j, k: (0, j)),
            ],
            out_specs=pl.BlockSpec((TM, TN), lambda i, j, k: (i, j)),
        ),
        compiler_params=pltpu.CompilerParams(
            dimension_semantics=("parallel", "parallel", "arbitrary"),
            vmem_limit_bytes=32 * 1024 * 1024),
    )(a, b, sb)


# --------------------------- glue: im2col ---------------------------

def im2col(x, k, stride, pad):
    # x: (N, H, W, C) f32 -> bf16 patches (N*Ho*Wo, k*k*C), order (kh, kw, C)
    x = x.astype(jnp.bfloat16)
    N, H, W, C = x.shape
    if pad > 0:
        x = jnp.pad(x, ((0, 0), (pad, pad), (pad, pad), (0, 0)))
    Hp, Wp = H + 2 * pad, W + 2 * pad
    Ho = (Hp - k) // stride + 1
    Wo = (Wp - k) // stride + 1
    cols = []
    for i in range(k):
        for j in range(k):
            cols.append(x[:, i:i + stride * (Ho - 1) + 1:stride,
                          j:j + stride * (Wo - 1) + 1:stride, :])
    patches = jnp.concatenate(cols, axis=-1) if len(cols) > 1 else cols[0]
    return patches.reshape(N * Ho * Wo, k * k * C), (N, Ho, Wo)


# --------------------------- parameters ---------------------------

class KeyGen:
    def __init__(self, seed):
        self.key = jax.random.PRNGKey(seed)

    def __call__(self):
        self.key, sub = jax.random.split(self.key)
        return sub


class ConvBN:
    """CNNBlock: Conv2d (+BatchNorm2d +LeakyReLU(0.1) if bn_act)."""

    def __init__(self, kg, cin, cout, ksize, stride, padding, bn_act=True):
        self.cin, self.cout = cin, cout
        self.k, self.stride, self.pad = ksize, stride, padding
        self.use_act = bn_act
        K = cin * ksize * ksize
        w = jax.random.normal(kg(), (ksize, ksize, cin, cout),
                              jnp.float32) / math.sqrt(K)
        wmat = w.reshape(K, cout)
        if bn_act:
            eps = 1e-5
            gamma = 1.0 + 0.1 * jax.random.normal(kg(), (cout,), jnp.float32)
            beta = 0.1 * jax.random.normal(kg(), (cout,), jnp.float32)
            mean = 0.05 * jax.random.normal(kg(), (cout,), jnp.float32)
            var = jnp.ones((cout,), jnp.float32)
            scale = gamma / jnp.sqrt(var + eps)
            bias = beta - mean * scale
        else:
            scale = jnp.ones((cout,), jnp.float32)
            bias = 0.1 * jax.random.normal(kg(), (cout,), jnp.float32)
        self.K = K
        self.Kp = round_up(K, LANE)
        self.Np = round_up(cout, LANE)
        self.wmat = jnp.pad(wmat,
                            ((0, self.Kp - K),
                             (0, self.Np - cout))).astype(jnp.bfloat16)
        sb = jnp.zeros((8, self.Np), jnp.float32)
        sb = sb.at[0, :cout].set(scale).at[1, :cout].set(bias)
        self.sb = sb


class Residual:
    def __init__(self, kg, channels, use_residual=True, num_repeats=1):
        self.use_residual = use_residual
        self.num_repeats = num_repeats
        self.blocks = []
        for _ in range(num_repeats):
            self.blocks.append((ConvBN(kg, channels, channels // 2, 1, 1, 0),
                                ConvBN(kg, channels // 2, channels, 3, 1, 1)))


class ScalePred:
    def __init__(self, kg, cin, num_classes):
        self.num_classes = num_classes
        self.c1 = ConvBN(kg, cin, 2 * cin, 3, 1, 1)
        self.c2 = ConvBN(kg, 2 * cin, (num_classes + 5) * 3, 1, 1, 0,
                         bn_act=False)


class Concat:
    pass


class Upsample:
    pass


def create_layers_first(kg, in_channels):
    layers, c = [], in_channels
    for module in CONFIG1:
        if isinstance(module, tuple):
            out_c, k, s = module
            layers.append(ConvBN(kg, c, out_c, k, s, 1 if k == 3 else 0))
            c = out_c
        elif isinstance(module, list):
            layers.append(Residual(kg, c, num_repeats=module[1]))
    return layers


def create_layers_both(kg, in_channels, num_classes):
    layers = []
    c = in_channels * N_CONC
    previous_ch = [32, 64, 128, 256, 512]
    res8 = []
    for module in CONFIG_BOTH:
        if isinstance(module, tuple):
            out_c, k, s = module
            layers.append(ConvBN(kg, c, out_c, k, s, 1 if k == 3 else 0))
            c = out_c
        elif isinstance(module, list):
            if module[0] == 'B':
                nr = module[1]
                if nr == 8:
                    res8.append(c)
                layers.append(Residual(kg, c, num_repeats=nr))
            elif module[0] == 'Conc':
                layers.append(Concat())
                c = c + previous_ch[0] * N_CONC
                previous_ch.pop(0)
        elif isinstance(module, str):
            if module == 'S':
                layers.append(Residual(kg, c, use_residual=False,
                                       num_repeats=1))
                layers.append(ConvBN(kg, c, c // 2, 1, 1, 0))
                layers.append(ScalePred(kg, c // 2, num_classes))
                c = c // 2
            elif module == 'U':
                layers.append(Upsample())
                c = c + res8[-1]
                res8.pop(-1)
    return layers


# --------------------------- forward ---------------------------

def apply_convbn(layer, x):
    patches, (N, Ho, Wo) = im2col(x, layer.k, layer.stride, layer.pad)
    M, K = patches.shape
    Mp = round_up(M, 16) if M <= 128 else round_up(M, 128)
    a = jnp.pad(patches, ((0, Mp - M), (0, layer.Kp - K)))
    y = gemm_bn_act(a, layer.wmat, layer.sb, layer.use_act)
    y = y[:M, :layer.cout]
    return y.reshape(N, Ho, Wo, layer.cout)


def apply_residual(layer, x):
    for (c1, c2) in layer.blocks:
        y = apply_convbn(c2, apply_convbn(c1, x))
        x = x + y if layer.use_residual else y
    return x


def apply_scalepred(layer, x):
    y = apply_convbn(layer.c1, x)
    y = apply_convbn(layer.c2, y)                       # (B, H, W, 18)
    B, H, W, C = y.shape
    y = jnp.transpose(y, (0, 3, 1, 2))                  # (B, 18, H, W)
    y = y.reshape(B, 3, layer.num_classes + 5, H, W)
    return jnp.transpose(y, (0, 1, 3, 4, 2))            # (B, 3, H, W, nc+5)


def upsample2x(x):  # nn.Upsample(scale_factor=2), mode='nearest'
    return jnp.repeat(jnp.repeat(x, 2, axis=1), 2, axis=2)


def yolo_forward(layers_first, layers_both, frame1_nchw, frame2_nchw,
                 flow_nchw):
    to_nhwc = lambda t: jnp.transpose(t, (0, 2, 3, 1))
    frame1, frame2, flow = map(to_nhwc, (frame1_nchw, frame2_nchw, flow_nchw))
    B = frame1.shape[0]

    # x = cat([frame1, frame2], C) ; x = cat([x, flow], C)
    x = jnp.concatenate([frame1, frame2, flow], axis=-1)

    # Per-frame feature extraction (shared weights): stack the three frames
    # along the batch axis and run the tower ONCE (3x fewer launches, 3x M).
    stacked = jnp.concatenate([frame1, frame2, flow], axis=0)  # (3B, H, W, C)
    feats = []                                                 # per-ConvBN
    h = stacked
    for layer in layers_first:
        if isinstance(layer, Residual):
            h = apply_residual(layer, h)
        else:
            h = apply_convbn(layer, h)
            feats.append(h)

    outputs = []
    routes = []
    for layer in layers_both:
        if isinstance(layer, ScalePred):
            outputs.append(apply_scalepred(layer, x))
            continue
        if isinstance(layer, Concat):
            f = feats.pop(0)
            # Split stacked batch back into frame1 / frame2 / flow features
            # (same channel order as the original per-frame concatenation).
            x = jnp.concatenate([x, f[:B], f[B:2 * B], f[2 * B:]], axis=-1)
            continue  # ConcatenateModule.forward is identity
        if isinstance(layer, Residual):
            x = apply_residual(layer, x)
            if layer.num_repeats == 8:
                routes.append(x)
        elif isinstance(layer, Upsample):
            x = upsample2x(x)
            x = jnp.concatenate([x, routes[-1]], axis=-1)
            routes.pop(-1)
        else:
            x = apply_convbn(layer, x)
    return outputs


# --------------------------- main ---------------------------

if __name__ == "__main__":
    B, C, H, W = 2, 3, 32, 32

    # Deterministic parameter initialization.
    kg = KeyGen(42)
    layers_first = create_layers_first(kg, C)
    layers_both = create_layers_both(kg, C, num_classes=1)

    # Deterministic inputs.
    key = jax.random.PRNGKey(0)
    k1, k2, k3 = jax.random.split(key, 3)
    frame1 = jax.random.normal(k1, (B, C, H, W), jnp.float32)
    frame2 = jax.random.normal(k2, (B, C, H, W), jnp.float32)
    # TODO(synk): cv2.calcOpticalFlowFarneback + HSV drawing + Otsu threshold
    # (optical_flow) has no Pallas/JAX equivalent; substitute a deterministic
    # synthetic "normalized flow" tensor of the same shape.
    flow = jax.random.normal(k3, (B, C, H, W), jnp.float32)

    outs = yolo_forward(layers_first, layers_both, frame1, frame2, flow)
    for o in outs:
        jax.block_until_ready(o)

    expected = [(B, 3, H // 32, W // 32, 6),
                (B, 3, H // 16, W // 16, 6),
                (B, 3, H // 8, W // 8, 6)]
    got = [tuple(o.shape) for o in outs]
    assert got == expected, (got, expected)
    assert all(bool(jnp.all(jnp.isfinite(o))) for o in outs)
    print("KERNEL_OK")
</pallas_src>

<mosaic_0001>
module attributes {stable_mosaic.version = 11 : i64} {
  func.func @_gemm_bn_act_kernel(%arg0: i32, %arg1: i32, %arg2: i32, %arg3: memref<128x128xbf16, #tpu.memory_space<vmem>>, %arg4: memref<128x128xbf16, #tpu.memory_space<vmem>>, %arg5: memref<8x128xf32, #tpu.memory_space<vmem>>, %arg6: memref<128x128xf32, #tpu.memory_space<vmem>>) attributes {dimension_semantics = [#tpu.dimension_semantics<parallel>, #tpu.dimension_semantics<parallel>, #tpu.dimension_semantics<arbitrary>], iteration_bounds = array<i64: 48, 1, 1>, scalar_prefetch = 0 : i64, scratch_operands = 0 : i64, tpu.core_type = #tpu.core_type<tc>, window_params = [{transform_indices = @transform_0, window_bounds = array<i64: 128, 128>}, {transform_indices = @transform_1, window_bounds = array<i64: 128, 128>}, {transform_indices = @transform_2, window_bounds = array<i64: 8, 128>}, {transform_indices = @transform_3, window_bounds = array<i64: 128, 128>}]} {
    %c0_i32 = arith.constant 0 : i32
    %0 = arith.cmpi eq, %arg2, %c0_i32 : i32
    %1 = arith.extui %0 : i1 to i32
    %c0_i32_0 = arith.constant 0 : i32
    %2 = arith.cmpi ne, %1, %c0_i32_0 : i32
    scf.if %2 {
      %cst_10 = arith.constant 0.000000e+00 : f32
      %12 = vector.broadcast %cst_10 : f32 to vector<128x128xf32>
      %c0_11 = arith.constant 0 : index
      %c0_12 = arith.constant 0 : index
      %13 = vector.load %arg6[%c0_11, %c0_12] : memref<128x128xf32, #tpu.memory_space<vmem>>, vector<128x128xf32>
      tpu.vector_store %arg6[%c0_11, %c0_12], %12 {strides = array<i32>} : memref<128x128xf32, #tpu.memory_space<vmem>>, vector<128x128xf32>,
    } else {
    }
    %c0 = arith.constant 0 : index
    %c0_1 = arith.constant 0 : index
    %3 = vector.load %arg6[%c0, %c0_1] : memref<128x128xf32, #tpu.memory_space<vmem>>, vector<128x128xf32>
    %c0_2 = arith.constant 0 : index
    %c0_3 = arith.constant 0 : index
    %4 = vector.load %arg3[%c0_2, %c0_3] : memref<128x128xbf16, #tpu.memory_space<vmem>>, vector<128x128xbf16>
    %c0_4 = arith.constant 0 : index
    %c0_5 = arith.constant 0 : index
    %5 = vector.load %arg4[%c0_4, %c0_5] : memref<128x128xbf16, #tpu.memory_space<vmem>>, vector<128x128xbf16>
    %cst = arith.constant dense<0.000000e+00> : vector<128x128xf32>
    %6 = tpu.matmul %4, %5, %cst {dimension_numbers = #tpu.dot_dimension_numbers<[1], [0], [0], [1], [0, 0, 1, 1], [], []>} : vector<128x128xbf16>, vector<128x128xbf16>, vector<128x128xf32> -> vector<128x128xf32>
    %7 = arith.addf %3, %6 : vector<128x128xf32>
    %c0_6 = arith.constant 0 : index
    %c0_7 = arith.constant 0 : index
    %8 = vector.load %arg6[%c0_6, %c0_7] : memref<128x128xf32, #tpu.memory_space<vmem>>, vector<128x128xf32>
    tpu.vector_store %arg6[%c0_6, %c0_7], %7 {strides = array<i32>} : memref<128x128xf32, #tpu.memory_space<vmem>>, vector<128x128xf32>,
    %c0_i32_8 = arith.constant 0 : i32
    %9 = arith.cmpi eq, %arg2, %c0_i32_8 : i32
    %10 = arith.extui %9 : i1 to i32
    %c0_i32_9 = arith.constant 0 : i32
    %11 = arith.cmpi ne, %10, %c0_i32_9 : i32
    scf.if %11 {
      %c0_10 = arith.constant 0 : index
      %c0_11 = arith.constant 0 : index
      %12 = vector.load %arg6[%c0_10, %c0_11] : memref<128x128xf32, #tpu.memory_space<vmem>>, vector<128x128xf32>
      %c0_12 = arith.constant 0 : index
      %c0_13 = arith.constant 0 : index
      %13 = vector.load %arg5[%c0_12, %c0_13] : memref<8x128xf32, #tpu.memory_space<vmem>>, vector<1x128xf32>
      %14 = vector.broadcast %13 : vector<1x128xf32> to vector<128x128xf32>
      %15 = arith.mulf %12, %14 : vector<128x128xf32>
      %c1 = arith.constant 1 : index
      %c0_14 = arith.constant 0 : index
      %16 = vector.load %arg5[%c1, %c0_14] : memref<8x128xf32, #tpu.memory_space<vmem>>, vector<1x128xf32>
      %17 = vector.broadcast %16 : vector<1x128xf32> to vector<128x128xf32>
      %18 = arith.addf %15, %17 : vector<128x128xf32>
      %cst_15 = arith.constant 0.000000e+00 : f32
      %19 = vector.broadcast %cst_15 : f32 to vector<128x128xf32>
      %20 = arith.cmpf ogt, %18, %19 : vector<128x128xf32>
      %cst_16 = arith.constant 1.000000e-01 : f32
      %21 = vector.broadcast %cst_16 : f32 to vector<128x128xf32>
      %22 = arith.mulf %21, %18 : vector<128x128xf32>
      %23 = arith.select %20, %18, %22 : vector<128x128xi1>, vector<128x128xf32>
      %c0_17 = arith.constant 0 : index
      %c0_18 = arith.constant 0 : index
      %24 = vector.load %arg6[%c0_17, %c0_18] : memref<128x128xf32, #tpu.memory_space<vmem>>, vector<128x128xf32>
      tpu.vector_store %arg6[%c0_17, %c0_18], %23 {strides = array<i32>} : memref<128x128xf32, #tpu.memory_space<vmem>>, vector<128x128xf32>,
    } else {
    }
    return
  }
  func.func @transform_0(%arg0: i32, %arg1: i32, %arg2: i32) -> (i32, i32) {
    %c0_i32 = arith.constant 0 : i32
    return %arg0, %arg2 : i32, i32
  }
  func.func @transform_1(%arg0: i32, %arg1: i32, %arg2: i32) -> (i32, i32) {
    %c0_i32 = arith.constant 0 : i32
    return %arg2, %arg1 : i32, i32
  }
  func.func @transform_2(%arg0: i32, %arg1: i32, %arg2: i32) -> (i32, i32) {
    %c0_i32 = arith.constant 0 : i32
    %c0_i32_0 = arith.constant 0 : i32
    return %c0_i32, %arg1 : i32, i32
  }
  func.func @transform_3(%arg0: i32, %arg1: i32, %arg2: i32) -> (i32, i32) {
    %c0_i32 = arith.constant 0 : i32
    return %arg0, %arg1 : i32, i32
  }
}

</mosaic_0001>

<bundles_post_ra>
// kernel: gemm_bn_act.1
= control target key start
LH: loop header
LB: loop body
LE: loop exit
PB: predicated region body
PF: predicated region fallthrough
CT: control target
= control target key end

     0   :  { %8 = vsyncpa [#allocation3], 0  ;;  %s1535_s0 = inlined_call_operand.hbm [shape: bf16[6144,128], index: 0, kind: input, shape index: {}]   ;;  %s1536_s1 = inlined_call_operand.hbm [shape: bf16[128,128], index: 1, kind: input, shape index: {}]   ;;  %s1537_s2 = inlined_call_operand.hbm [shape: f32[8,128], index: 2, kind: input, shape index: {}]   ;;  %s1538_s3 = inlined_call_operand.hbm [shape: f32[6144,128], index: 3, kind: output, shape index: {}]  }
   0x1   :  { %10 = vsyncpa [#allocation3 + $0x1], 0 }
   0x2   :  { %11 = vsyncpa [#allocation6], 0 }
   0x3   :  { %12 = vsyncpa [#allocation4], 0 }
   0x4   :  { %14 = vsyncpa [#allocation4 + $0x1], 0  ;;  %s1217_s12 = smov 0   ;;  %s1219_s13 = smov 0  }
   0x5   :  { %s1221_s14 = smov 0   ;;  %s1223_s15 = smov 0  }
   0x6   :  { %s1225_s16 = smov 0   ;;  %s1227_s17 = smov 0  }
   0x7 LB: > { %s808_s18 = sadd.s32 4294967295, %s1187_s17   ;;  %s809_s19 = sadd.s32 4294967294, %s1187_s17   ;;  %s1187_s17 = sphi %s1227_s17, %s20_s17   ;;  %s1183_s16 = sphi %s1225_s16, %s1560_s16   ;;  %s1179_s15 = sphi %s1223_s15, %s1559_s15   ;;  %s1175_s14 = sphi %s1221_s14, %s1558_s14   ;;  %s1171_s13 = sphi %s1219_s13, %s1557_s13   ;;  %s1167_s12 = sphi %s1217_s12, %s1556_s12  }
   0x8   : > { %p61_p0 = scmp.ne.s32.totalorder %s1171_s13, %s1167_s12  ;;  %p1251_p1 = scmp.eq.s32.totalorder %s808_s18, 0 }
   0x9   : > { %p1255_p2 = scmp.eq.s32.totalorder %s808_s18, 47  ;;  %p147_p3 = scmp.eq.s32.totalorder %s809_s19, 47 }
   0xa   : > { %s1543_s20 = scalar_select %p1251_p1, 1, 0 }
   0xb   : > { %s1544_s21 = scalar_select %p1255_p2, 1, 0 }
   0xc   : > { %p1261_p4 = por %p1251_p1, %p61_p0  ;;  %p810_p5 = scmp.ge.s32.totalorder %s1187_s17, 1 }
   0xd   : > { %p1266_p6 = por %p147_p3, %p61_p0  ;;  %p154_p7 = scmp.lt.s32.totalorder %s1187_s17, 49 }
   0xe   : > { %s1545_s22 = scalar_select %p1261_p4, 1, 0 }
   0xf   : > { %s1546_s23 = scalar_select %p1266_p6, 1, 0 }
  0x10   : > { %p1271_p8 = pnand %p810_p5, %p154_p7  ;;  %s1189_s25 = smov [#allocation5]  }
  0x11   : > { %s170_s26 = sshll.u32 %s1189_s25, 4  ;;  %s1190_s28 = smov [#allocation7]   ;;  %s171_s26 = int_to_ptr.vmem [resolvable:$true] %s170_s26 }
  0x12   : > { %s1547_s24 = scalar_select %p1271_p8, 1, 0 }
  0x13   : > { %p923_p9 = pneg %p1271_p8  ;;  %s186_s29 = sshll.u32 %s1190_s28, 4  ;;  %s1283_s29 = int_to_ptr.vmem [resolvable:$true] %s186_s29 }
  0x14   : > { %s1015_s5 = scalar_lea.hbm %s1536_s1, 1024 }
  0x15   : > { %p1279_p10 = pnand %p923_p9, %p1251_p1  ;;  %p1016_p11 = scmp.ne.s32.totalorder %s1536_s1, %s1015_s5 }
  0x16   : > { %p1022_p3 = scmp.lt.u32.totalorder %s1015_s5, %s1536_s1 }
  0x17   : > { %p1017_p12 = pneg %p1279_p10 }
  0x19   : > { %p1018_p13 = pnand %p1017_p12, %p1016_p11 }
  0x1b   : > { %p1019_p0 = pneg %p1018_p13 }
  0x1d   : > { %p1024_p5 = pnand %p1022_p3, %p1019_p0 }
  0x1f   : > { %1027 = shalt.err (!%p1024_p5)
}
  0x20   : > { %s1028_s10 = scalar_lea.vmem %s171_s26, 1024  ;;  %p1036_p1 = scmp.lt.s32.totalorder %s171_s26, %s171_s26 }
  0x21   : > { %p1029_p7 = scmp.ne.s32.totalorder %s171_s26, %s1028_s10  ;;  %p1037_p4 = scmp.lt.s32.totalorder %s1028_s10, %s1028_s10 }
  0x23   : > { %p1031_p9 = pnand %p1029_p7, %p1017_p12  ;;  %p1038_p8 = por %p1037_p4, %p1036_p1 }
  0x25   : > { %p1032_p6 = pneg %p1031_p9 }
  0x27   : > { %p1039_p2 = pnand %p1038_p8, %p1032_p6 }
  0x29   : > { %1042 = shalt.err (!%p1039_p2)
}
  0x2a   : > { %s1191_s11 = smov 64   ;;  %s1192_s18 = smov 4  }
  0x2b   : > { %926 = dma.hbm_to_vmem [thread:$0]  (!%p1279_p10), %s1536_s1, 1024, %s171_s26, [#allocation6], %s1191_s11, %s1191_s11, %s1192_s18  }
  0x2c   : > { %s1043_s4 = scalar_lea.hbm %s1537_s2, 128 }
  0x2d   : > { %p1044_p1 = scmp.ne.s32.totalorder %s1537_s2, %s1043_s4  ;;  %p1050_p6 = scmp.lt.u32.totalorder %s1043_s4, %s1537_s2 }
  0x2f   : > { %p1046_p2 = pnand %p1044_p1, %p1017_p12 }
  0x31   : > { %p1047_p4 = pneg %p1046_p2 }
  0x33   : > { %p1052_p8 = pnand %p1050_p6, %p1047_p4 }
  0x35   : > { %1055 = shalt.err (!%p1052_p8)
}
  0x36   : > { %s1056_s26 = scalar_lea.vmem %s1283_s29, 128  ;;  %p1064_p3 = scmp.lt.s32.totalorder %s1283_s29, %s1283_s29 }
  0x37   : > { %p1057_p11 = scmp.ne.s32.totalorder %s1283_s29, %s1056_s26  ;;  %p1065_p5 = scmp.lt.s32.totalorder %s1056_s26, %s1056_s26 }
  0x39   : > { %p1059_p13 = pnand %p1057_p11, %p1017_p12  ;;  %p1066_p7 = por %p1065_p5, %p1064_p3 }
  0x3b   : > { %p1060_p0 = pneg %p1059_p13 }
  0x3d   : > { %p1067_p9 = pnand %p1066_p7, %p1060_p0 }
  0x3f   : > { %1070 = shalt.err (!%p1067_p9)
}
  0x40   : > { %929 = dma.hbm_to_vmem [thread:$0]  (!%p1279_p10), %s1537_s2, 128, %s1283_s29, [#allocation6]  }
  0x41   : > { %s39_s19 = sadd.s32 1, %s1183_s16  ;;  %s48_s25 = sadd.s32 1, %s1175_s14 }
  0x42   : > { %p41_p12 = scmp.ge.s32.totalorder %s39_s19, 48  ;;  %p55_p1 = scmp.ne.s32.totalorder %s1175_s14, %s1171_s13 }
  0x43   : > { %p56_p2 = scmp.eq.s32.totalorder %s1187_s17, 0  ;;  %p940_p4 = scmp.lt.s32.totalorder %s1187_s17, 48 }
  0x44   : > { %s1562_s19 = smov (%p41_p12, %s39_s19), 0  ;;  %p1549_p8 = scmp.ne.s32.totalorder %s1544_s21, 0 }
  0x45   : > { %p57_p6 = por %p56_p2, %p55_p1  ;;  %s43_s28 = ssub.s32 %s1183_s16, %s1562_s19 }
  0x46   : > { %p1345_p11 = por %p1549_p8, %p55_p1  ;;  %s197_s30 = sand.u32 1, %s1175_s14  }
  0x47   : > { %p46_p13 = scmp.eq.s32.totalorder %s43_s28, 0  ;;  %s814_s29 = sshll.u32 %s197_s30, 6 }
  0x48   : > { %s845_s4 = sshll.u32 %s1183_s16, 10  ;;  %s201_s21 = scalar_lea.vmem [#allocation2], %s814_s29 }
  0x49   : > { %s1354_s5 = scalar_select %p46_p13, %s1175_s14, %s48_s25  }
  0x4a   : > { %s1359_s8 = scalar_lea.hbm %s1535_s0, %s845_s4  ;;  %s209_s26 = sshll.u32 %s201_s21, 4  ;;  %s1367_s26 = int_to_ptr.vmem [resolvable:$true] %s209_s26 }
  0x4b   : > { %p1363_p10 = pnand %p940_p4, %p57_p6  ;;  %s1369_s10 = scalar_lea.sflag [#allocation3], %s197_s30 }
  0x4c   : > { %s1071_s25 = scalar_lea.hbm %s1359_s8, 1024  ;;  %s1076_s4 = scalar_lea.hbm %s1535_s0, 49152 }
  0x4d   : > { %p1072_p0 = scmp.ne.s32.totalorder %s1359_s8, %s1071_s25  ;;  %p1073_p3 = pneg %p1363_p10 }
  0x4e   : > { %p1077_p9 = scmp.lt.u32.totalorder %s1359_s8, %s1535_s0  ;;  %p1078_p12 = scmp.lt.u32.totalorder %s1076_s4, %s1071_s25 }
  0x4f   : > { %p1074_p5 = pnand %p1073_p3, %p1072_p0  ;;  %p1080_p2 = scmp.lt.u32.totalorder %s1071_s25, %s1359_s8 }
  0x50   : > { %p1079_p1 = por %p1078_p12, %p1077_p9 }
  0x51   : > { %p1075_p7 = pneg %p1074_p5 }
  0x52   : > { %p1081_p4 = por %p1080_p2, %p1079_p1 }
  0x54   : > { %p1082_p6 = pnand %p1081_p4, %p1075_p7 }
  0x56   : > { %1085 = shalt.err (!%p1082_p6)
}
  0x57   : > { %s1086_s30 = scalar_lea.vmem %s1367_s26, 1024  ;;  %s1193_s21 = smov [#allocation2]  }
  0x58   : > { %p1087_p8 = scmp.ne.s32.totalorder %s1367_s26, %s1086_s30  ;;  %s1091_s28 = sshll.u32 %s1193_s21, 4  ;;  %s1092_s28 = int_to_ptr.vmem [resolvable:$false] %s1091_s28 }
  0x59   : > { %s1093_s29 = scalar_lea.vmem %s1092_s28, 2048  ;;  %p1094_p5 = scmp.lt.s32.totalorder %s1367_s26, %s1092_s28 }
  0x5a   : > { %p1089_p13 = pnand %p1087_p8, %p1073_p3  ;;  %p1095_p9 = scmp.lt.s32.totalorder %s1093_s29, %s1086_s30 }
  0x5c   : > { %p1090_p0 = pneg %p1089_p13  ;;  %p1096_p12 = por %p1095_p9, %p1094_p5 }
  0x5e   : > { %p1097_p1 = pnand %p1096_p12, %p1090_p0 }
  0x60   : > { %1100 = shalt.err (!%p1097_p1)
}
  0x61   : > { %933 = dma.hbm_to_vmem [thread:$0]  (!%p1363_p10), %s1359_s8, 1024, %s1367_s26, %s1369_s10, %s1191_s11, %s1191_s11, %s1192_s18  }
  0x62   : > { %p1552_p3 = scmp.ne.s32.totalorder %s1547_s24, 0 }
  0x63   : > { %s1403_s25 = sand.u32 (!%p1552_p3), 1, %s1171_s13   ;;  %p1553_p7 = scmp.ne.s32.totalorder (!%p1552_p3), %s1545_s22, 0 }
  0x64   : > { %221 = sbr.rel (%p1552_p3) target bundleno = 394 (0x18a), region = 32  ;;  %s818_s4 = sshll.u32 (!%p1552_p3), %s1403_s25, 6 }
  0x65   : > { %s224_s6 = scalar_lea.sflag (!%p1552_p3), [#allocation3], %s1403_s25  ;;  %s1407_s7 = scalar_lea.vmem (!%p1552_p3), [#allocation2], %s818_s4 }
  0x6b   : > { %1154 = dma.done.wait (%p1553_p7), %s224_s6, 1024  }
  0x6c   : > { %1156 = vsyncadd (%p1553_p7), %s224_s6, 4294966272  ;;  %p1554_p10 = scmp.ne.s32.totalorder %s1543_s20, 0 }
  0x6e   : > { %1158 = dma.done.wait (%p1554_p10), [#allocation6], 1152  }
  0x6f   : > { %1160 = vsyncadd (%p1554_p10), [#allocation6], 4294966144  ;;  %v999_v0 = vld [vmem:[#allocation5] sm:$0xff]   ;;  %v1000_v1 = vld [vmem:[#allocation5 + $0x8] sm:$0xff]   ;;  %s821_s20 = sshll.u32 %s1403_s25, 7  ;;  %s846_s24 = sshll.u32 %s1179_s15, 11 }
  0x70   : > { %863 = vmatprep.subr.bf16.mxu0 %v999_v0  ;;  %895 = vmatprep.subr.bf16.mxu1 %v999_v0  ;;  %v1001_v2 = vld [vmem:[#allocation5 + $0x10] sm:$0xff]   ;;  %v1002_v3 = vld [vmem:[#allocation5 + $0x18] sm:$0xff]   ;;  %v1007_v4 = vld [vmem:[%s1407_s7] sm:$0xff]   ;;  %s1444_s22 = scalar_lea.vmem [#allocation8], %s821_s20  ;;  %s1481_s8 = scalar_lea.hbm %s1538_s3, %s846_s24 }
  0x71   : > { %864 = vmatpush3.bf16.msra.mxu0 %v999_v0  ;;  %903 = vmatpush3.bf16.msra.mxu1 %v999_v0  ;;  %v1008_v5 = vld [vmem:[%s1407_s7 + $0x20] sm:$0xff]   ;;  %v1004_v7 = vld [vmem:[#allocation5 + $0x28] sm:$0xff]   ;;  %v1005_v8 = vld [vmem:[#allocation5 + $0x30] sm:$0xff]   ;;  %s695_s11 = sshll.u32 %s1444_s22, 4  ;;  %s681_s26 = scalar_lea.sflag [#allocation4], %s1403_s25  ;;  %s1483_s11 = int_to_ptr.vmem [resolvable:$true] %s695_s11 }
  0x72   : > { %865 = vmatprep.subr.bf16.mxu0 %v1000_v1  ;;  %896 = vmatprep.subr.bf16.mxu1 %v1000_v1  ;;  %v1003_v6 = vld [vmem:[#allocation5 + $0x20] sm:$0xff]   ;;  %v1006_v9 = vld [vmem:[#allocation5 + $0x38] sm:$0xff]   ;;  %v1009_v10 = vld [vmem:[%s1407_s7 + $0x8] sm:$0xff]   ;;  %s1101_s9 = scalar_lea.vmem %s1483_s11, 2048  ;;  %s1194_s10 = smov [#allocation8]  }
  0x73   : > { %879 = vmatprep.mubr.bf16.mxu0 %v1007_v4  ;;  %887 = vmatprep.mubr.bf16.mxu1 %v1008_v5  ;;  %v1010_v11 = vld [vmem:[%s1407_s7 + $0x28] sm:$0xff]   ;;  %v1011_v12 = vld [vmem:[%s1407_s7 + $0x10] sm:$0xff]   ;;  %v1013_v14 = vld [vmem:[%s1407_s7 + $0x18] sm:$0xff]   ;;  %p1102_p2 = scmp.ne.s32.totalorder %s1483_s11, %s1101_s9  ;;  %s1105_s30 = sshll.u32 %s1194_s10, 4  ;;  %s1106_s30 = int_to_ptr.vmem [resolvable:$false] %s1105_s30 }
  0x74   : > { %v1012_v13 = vld [vmem:[%s1407_s7 + $0x30] sm:$0xff]   ;;  %v1014_v15 = vld [vmem:[%s1407_s7 + $0x38] sm:$0xff]   ;;  %v1425_v17 = vld [vmem:[#allocation7] ss:$0 sm:$0xff]  ;;  %s1107_s21 = scalar_lea.vmem %s1106_s30, 4096  ;;  %p1108_p8 = scmp.lt.s32.totalorder %s1483_s11, %s1106_s30 }
  0x75   : > { %866 = vmatpush3.bf16.msra.mxu0 %v1000_v1  ;;  %904 = vmatpush3.bf16.msra.mxu1 %v1000_v1  ;;  %v1427_v21 = vld [vmem:[#allocation7 + $0x1] ss:$0 sm:$0xff]  ;;  %p1103_p4 = pnand %p1102_p2, %p1345_p11  ;;  %p1109_p13 = scmp.lt.s32.totalorder %s1107_s21, %s1101_s9 }
  0x76   : > { %867 = vmatprep.subr.bf16.mxu0 %v1001_v2  ;;  %897 = vmatprep.subr.bf16.mxu1 %v1001_v2 }
  0x77   : > { %p1104_p6 = pneg %p1103_p4  ;;  %p1110_p0 = por %p1109_p13, %p1108_p8 }
  0x79   : > { %868 = vmatpush3.bf16.msra.mxu0 %v1001_v2  ;;  %905 = vmatpush3.bf16.msra.mxu1 %v1001_v2  ;;  %p1111_p5 = pnand %p1110_p0, %p1104_p6 }
  0x7a   : > { %869 = vmatprep.subr.bf16.mxu0 %v1002_v3  ;;  %898 = vmatprep.subr.bf16.mxu1 %v1002_v3 }
  0x7d   : > { %870 = vmatpush3.bf16.msra.mxu0 %v1002_v3  ;;  %906 = vmatpush3.bf16.msra.mxu1 %v1002_v3 }
  0x7e   : > { %871 = vmatprep.subr.bf16.mxu0 %v1003_v6  ;;  %899 = vmatprep.subr.bf16.mxu1 %v1003_v6 }
  0x81   : > { %872 = vmatpush3.bf16.msra.mxu0 %v1003_v6  ;;  %907 = vmatpush3.bf16.msra.mxu1 %v1003_v6 }
  0x82   : > { %873 = vmatprep.subr.bf16.mxu0 %v1004_v7  ;;  %900 = vmatprep.subr.bf16.mxu1 %v1004_v7 }
  0x85   : > { %874 = vmatpush3.bf16.msra.mxu0 %v1004_v7  ;;  %908 = vmatpush3.bf16.msra.mxu1 %v1004_v7 }
  0x86   : > { %875 = vmatprep.subr.bf16.mxu0 %v1005_v8  ;;  %901 = vmatprep.subr.bf16.mxu1 %v1005_v8 }
  0x89   : > { %876 = vmatpush3.bf16.msra.mxu0 %v1005_v8  ;;  %909 = vmatpush3.bf16.msra.mxu1 %v1005_v8 }
  0x8a   : > { %877 = vmatprep.subr.bf16.mxu0 %v1006_v9  ;;  %902 = vmatprep.subr.bf16.mxu1 %v1006_v9 }
  0x8d   : > { %878 = vmatpush3.bf16.msra.mxu0 %v1006_v9  ;;  %910 = vmatpush3.bf16.msra.mxu1 %v1006_v9 }
  0x90   : > { %880 = vmatmul.mubr.bf16.vlgmr.msra.gmra.mrb[0].mxu0 %v1009_v10  ;;  %888 = vmatmul.mubr.bf16.vlgmr.msra.gmra.mrb[0].mxu1 %v1010_v11 }
  0x91   : > { %883 = vmatprep.mubr.bf16.mxu0 %v1011_v12  ;;  %891 = vmatprep.mubr.bf16.mxu1 %v1012_v13 }
  0x98   : > { %884 = vmatmul.mubr.bf16.gmra.mrb[4].mxu0 %v1013_v14  ;;  %892 = vmatmul.mubr.bf16.gmra.mrb[4].mxu1 %v1014_v15 }
 0x163   : > { %v881_v16 = vpop.f32.mrb[0].mxu0  ;;  %v889_v18 = vpop.f32.mrb[0].mxu1 }
 0x164   : > { %v460_v19 = vpop.f32.mrb[1].mxu0  ;;  %v492_v20 = vpop.f32.mrb[1].mxu1  ;;  %v581_v24 = vmul.f32 %v881_v16, %v1425_v17  ;;  %v589_v25 = vmul.f32 %v889_v18, %v1425_v17 }
 0x165   : > { %v882_v22 = vpop.f32.mrb[2].mxu0  ;;  %v890_v23 = vpop.f32.mrb[2].mxu1  ;;  %v579_v28 = vmul.f32 %v1425_v17, %v460_v19  ;;  %v587_v29 = vmul.f32 %v1425_v17, %v492_v20 }
 0x166   : > { %v463_v26 = vpop.f32.mrb[3].mxu0  ;;  %v495_v27 = vpop.f32.mrb[3].mxu1  ;;  %v602_v30 = vadd.f32 %v1427_v21, %v581_v24  ;;  %v610_v31 = vadd.f32 %v1427_v21, %v589_v25  ;;  %v582_v32 = vmul.f32 %v882_v22, %v1425_v17  ;;  %v590_v33 = vmul.f32 %v890_v23, %v1425_v17 }
 0x167   : > { %v600_v34 = vadd.f32 %v1427_v21, %v579_v28  ;;  %v608_v35 = vadd.f32 %v1427_v21, %v587_v29  ;;  %v580_v36 = vmul.f32 %v1425_v17, %v463_v26  ;;  %v588_v37 = vmul.f32 %v1425_v17, %v495_v27 }
 0x168   : > { %vm618_vm0 = vcmp.gt.f32.partialorder %v602_v30, 0.0  ;;  %v634_v38 = vmul.f32 0.1, %v602_v30  ;;  %vm626_vm1 = vcmp.gt.f32.partialorder %v610_v31, 0.0  ;;  %v642_v39 = vmul.f32 0.1, %v610_v31 }
 0x169   : > { %vm616_vm2 = vcmp.gt.f32.partialorder %v600_v34, 0.0  ;;  %v632_v40 = vmul.f32 0.1, %v600_v34  ;;  %vm624_vm3 = vcmp.gt.f32.partialorder %v608_v35, 0.0  ;;  %v640_v41 = vmul.f32 0.1, %v608_v35 }
 0x16a   : > { %v650_v42 = vsel %vm618_vm0, %v602_v30, %v634_v38  ;;  %v658_v43 = vsel %vm626_vm1, %v610_v31, %v642_v39  ;;  %v603_v44 = vadd.f32 %v1427_v21, %v582_v32  ;;  %v611_v45 = vadd.f32 %v1427_v21, %v590_v33 }
 0x16b   : > { %v885_v46 = vpop.f32.mrb[4].mxu0  ;;  %v893_v47 = vpop.f32.mrb[4].mxu1  ;;  %666 = vst [vmem:[%s1444_s22 + $0x10] sm:$0xff] %v650_v42  ;;  %674 = vst [vmem:[%s1444_s22 + $0x50] sm:$0xff] %v658_v43  ;;  %v648_v48 = vsel %vm616_vm2, %v600_v34, %v632_v40  ;;  %v656_v49 = vsel %vm624_vm3, %v608_v35, %v640_v41  ;;  %v601_v50 = vadd.f32 %v1427_v21, %v580_v36 }
 0x16c   : > { %v609_v51 = vadd.f32 %v1427_v21, %v588_v37  ;;  %v476_v52 = vpop.f32.mrb[5].mxu0  ;;  %v508_v53 = vpop.f32.mrb[5].mxu1  ;;  %664 = vst [vmem:[%s1444_s22] sm:$0xff] %v648_v48  ;;  %672 = vst [vmem:[%s1444_s22 + $0x40] sm:$0xff] %v656_v49  ;;  %vm619_vm4 = vcmp.gt.f32.partialorder %v603_v44, 0.0  ;;  %v635_v54 = vmul.f32 0.1, %v603_v44  ;;  %v585_v2 = vmul.f32 %v885_v46, %v1425_v17 }
 0x16d   : > { %vm627_vm5 = vcmp.gt.f32.partialorder %v611_v45, 0.0  ;;  %v643_v55 = vmul.f32 0.1, %v611_v45  ;;  %vm617_vm6 = vcmp.gt.f32.partialorder %v601_v50, 0.0  ;;  %v633_v56 = vmul.f32 0.1, %v601_v50 }
 0x16e   : > { %vm625_vm7 = vcmp.gt.f32.partialorder %v609_v51, 0.0  ;;  %v641_v57 = vmul.f32 0.1, %v609_v51  ;;  %v651_v58 = vsel %vm619_vm4, %v603_v44, %v635_v54  ;;  %v886_v60 = vpop.f32.mrb[6].mxu0  ;;  %v894_v61 = vpop.f32.mrb[6].mxu1  ;;  %v593_v3 = vmul.f32 %v893_v47, %v1425_v17 }
 0x16f   : > { %v659_v59 = vsel %vm627_vm5, %v611_v45, %v643_v55  ;;  %667 = vst [vmem:[%s1444_s22 + $0x18] sm:$0xff] %v651_v58  ;;  %v649_v62 = vsel %vm617_vm6, %v601_v50, %v633_v56  ;;  %v479_v0 = vpop.f32.mrb[7].mxu0  ;;  %v511_v1 = vpop.f32.mrb[7].mxu1  ;;  %v583_v4 = vmul.f32 %v1425_v17, %v476_v52  ;;  %v591_v5 = vmul.f32 %v1425_v17, %v508_v53 }
 0x170   : > { %675 = vst [vmem:[%s1444_s22 + $0x58] sm:$0xff] %v659_v59  ;;  %v657_v63 = vsel %vm625_vm7, %v609_v51, %v641_v57  ;;  %665 = vst [vmem:[%s1444_s22 + $0x8] sm:$0xff] %v649_v62  ;;  %v606_v6 = vadd.f32 %v1427_v21, %v585_v2  ;;  %v614_v7 = vadd.f32 %v1427_v21, %v593_v3 }
 0x171   : > { %673 = vst [vmem:[%s1444_s22 + $0x48] sm:$0xff] %v657_v63  ;;  %v586_v8 = vmul.f32 %v886_v60, %v1425_v17  ;;  %v594_v9 = vmul.f32 %v894_v61, %v1425_v17  ;;  %v604_v10 = vadd.f32 %v1427_v21, %v583_v4  ;;  %v612_v11 = vadd.f32 %v1427_v21, %v591_v5 }
 0x172   : > { %v584_v12 = vmul.f32 %v1425_v17, %v479_v0  ;;  %v592_v13 = vmul.f32 %v1425_v17, %v511_v1  ;;  %vm622_vm8 = vcmp.gt.f32.partialorder %v606_v6, 0.0  ;;  %v638_v14 = vmul.f32 0.1, %v606_v6 }
 0x173   : > { %vm630_vm9 = vcmp.gt.f32.partialorder %v614_v7, 0.0  ;;  %v646_v15 = vmul.f32 0.1, %v614_v7  ;;  %vm620_vm10 = vcmp.gt.f32.partialorder %v604_v10, 0.0  ;;  %v636_v16 = vmul.f32 0.1, %v604_v10 }
 0x174   : > { %vm628_vm11 = vcmp.gt.f32.partialorder %v612_v11, 0.0  ;;  %v644_v18 = vmul.f32 0.1, %v612_v11  ;;  %v654_v19 = vsel %vm622_vm8, %v606_v6, %v638_v14  ;;  %v607_v22 = vadd.f32 %v1427_v21, %v586_v8 }
 0x175   : > { %v662_v20 = vsel %vm630_vm9, %v614_v7, %v646_v15  ;;  %v615_v23 = vadd.f32 %v1427_v21, %v594_v9  ;;  %670 = vst [vmem:[%s1444_s22 + $0x30] sm:$0xff] %v654_v19  ;;  %v652_v17 = vsel %vm620_vm10, %v604_v10, %v636_v16  ;;  %v605_v25 = vadd.f32 %v1427_v21, %v584_v12 }
 0x176   : > { %678 = vst [vmem:[%s1444_s22 + $0x70] sm:$0xff] %v662_v20  ;;  %v660_v24 = vsel %vm628_vm11, %v612_v11, %v644_v18  ;;  %v613_v26 = vadd.f32 %v1427_v21, %v592_v13  ;;  %668 = vst [vmem:[%s1444_s22 + $0x20] sm:$0xff] %v652_v17  ;;  %vm623_vm12 = vcmp.gt.f32.partialorder %v607_v22, 0.0  ;;  %v639_v27 = vmul.f32 0.1, %v607_v22 }
 0x177   : > { %676 = vst [vmem:[%s1444_s22 + $0x60] sm:$0xff] %v660_v24  ;;  %vm631_vm13 = vcmp.gt.f32.partialorder %v615_v23, 0.0  ;;  %v647_v28 = vmul.f32 0.1, %v615_v23  ;;  %vm621_vm14 = vcmp.gt.f32.partialorder %v605_v25, 0.0 }
 0x178   : > { %v637_v29 = vmul.f32 0.1, %v605_v25  ;;  %vm629_vm15 = vcmp.gt.f32.partialorder %v613_v26, 0.0  ;;  %v645_v30 = vmul.f32 0.1, %v613_v26  ;;  %v655_v21 = vsel %vm623_vm12, %v607_v22, %v639_v27 }
 0x179   : > { %v663_v31 = vsel %vm631_vm13, %v615_v23, %v647_v28  ;;  %671 = vst [vmem:[%s1444_s22 + $0x38] sm:$0xff] %v655_v21 }
 0x17a   : > { %679 = vst [vmem:[%s1444_s22 + $0x78] sm:$0xff] %v663_v31  ;;  %v653_v32 = vsel %vm621_vm14, %v605_v25, %v637_v29  ;;  %v661_v33 = vsel %vm629_vm15, %v613_v26, %v645_v30 }
 0x17b   : > { %669 = vst [vmem:[%s1444_s22 + $0x28] sm:$0xff] %v653_v32  ;;  %677 = vst [vmem:[%s1444_s22 + $0x68] sm:$0xff] %v661_v33 }
 0x17c   : > { %1114 = shalt.err (!%p1111_p5)
}
 0x17d   : > { %s1115_s28 = scalar_lea.hbm %s1481_s8, 2048  ;;  %s1119_s6 = scalar_lea.hbm %s1538_s3, 98304 }
 0x17e   : > { %p1116_p9 = scmp.ne.s32.totalorder %s1481_s8, %s1115_s28  ;;  %p1120_p3 = scmp.lt.u32.totalorder %s1481_s8, %s1538_s3 }
 0x17f   : > { %p1121_p7 = scmp.lt.u32.totalorder %s1119_s6, %s1115_s28  ;;  %p1123_p2 = scmp.lt.u32.totalorder %s1115_s28, %s1481_s8 }
 0x180   : > { %p1117_p12 = pnand %p1116_p9, %p1345_p11 }
 0x181   : > { %p1122_p10 = por %p1121_p7, %p1120_p3 }
 0x182   : > { %p1118_p1 = pneg %p1117_p12 }
 0x183   : > { %p1124_p4 = por %p1123_p2, %p1122_p10 }
 0x185   : > { %p1125_p6 = pnand %p1124_p4, %p1118_p1 }
 0x187   : > { %1128 = shalt.err (!%p1125_p6)
}
 0x188   : > { %s1195_s22 = smov 128   ;;  %s1196_s24 = smov 8  }
 0x189   : > { %921 = dma.vmem_to_hbm [thread:$0]  (%p1345_p11), %s1483_s11, 2048, %s1481_s8, %s681_s26, %s1195_s22, %s1195_s22, %s1196_s24  }
 0x18a PF: > { %p943_p8 = scmp.ge.s32.totalorder %s1187_s17, 2  ;;  %s710_s15 = sand.u32 1, %s1167_s12  }
 0x18b   : > { %p1555_p13 = scmp.ne.s32.totalorder %s1546_s23, 0  ;;  %s711_s18 = scalar_lea.sflag [#allocation4], %s710_s15 }
 0x18d   : > { %p935_p0 = pnand %p943_p8, %p1555_p13 }
 0x18f   : > { %1162 = dma.done.wait (!%p935_p0), %s711_s18, 2048  }
 0x190   : > { %1164 = vsyncadd (!%p935_p0), %s711_s18, 4294965248  ;;  %s20_s17 = sadd.s32 1, %s1187_s17   ;;  %s1556_s12 = smov %s1171_s13 }
 0x191   : > { %p17_p5 = scmp.ge.s32.totalorder %s20_s17, 50   ;;  %s1557_s13 = smov %s1175_s14 }
 0x192   : > { %s1558_s14 = smov %s1354_s5  ;;  %s1559_s15 = smov %s1183_s16 }
 0x193   : > { %s1560_s16 = smov %s1562_s19  ;;  %19 = sbr.rel (!%p17_p5) target bundleno = 7 (0x7), region = 95 }
 0x19a   :  { %716 = vsyncpa [#allocation3], 1 }
 0x19b   :  { %718 = vsyncpa [#allocation3 + $0x1], 1 }
 0x19c   :  { %719 = vsyncpa [#allocation6], 1 }
 0x19d   :  { %720 = vsyncpa [#allocation4], 1 }
 0x19e   :  { %722 = vsyncpa [#allocation4 + $0x1], 1 }

</bundles_post_ra>
